<compile_context>
chip_gen: v6e
topology: v6e:2x2x1
jax: 0.10.0
libtpu: 0.0.40
codegen_flags: <defaults>
</compile_context>

<pallas_src>
import math
from functools import partial, lru_cache

import jax
import jax.numpy as jnp
from jax.experimental import pallas as pl
from jax.experimental.pallas import tpu as pltpu


# ----------------------------------------------------------------------------
# Positional encoding table (matches the PyTorch _build_positional_encoding,
# including odd d_model handling).
# ----------------------------------------------------------------------------
def build_positional_encoding(seq_len: int, d_model: int) -> jnp.ndarray:
    position = jnp.arange(seq_len, dtype=jnp.float32)[:, None]
    div_term = jnp.exp(
        jnp.arange(0, d_model, 2, dtype=jnp.float32) * (-math.log(10000.0) / d_model)
    )
    pe = jnp.zeros((seq_len, d_model), dtype=jnp.float32)
    n_even = (d_model + 1) // 2
    n_odd = d_model // 2
    pe = pe.at[:, 0::2].set(jnp.sin(position * div_term[:n_even]))
    pe = pe.at[:, 1::2].set(jnp.cos(position * div_term[:n_odd]))
    return pe


# ----------------------------------------------------------------------------
# Small helpers
# ----------------------------------------------------------------------------
@lru_cache(maxsize=1)
def _vmem_budget():
    """(row-block byte target, vmem_limit_bytes) chosen from the chip's VMEM."""
    try:
        cap = pltpu.get_tpu_info().vmem_capacity_bytes
    except Exception:  # pragma: no cover - conservative fallback
        cap = 64 * 1024 * 1024
    if cap >= 100 * 1024 * 1024:            # v5e / v6e: 128 MiB physical VMEM
        return 6 * 1024 * 1024, 64 * 1024 * 1024
    return 2 * 1024 * 1024, 32 * 1024 * 1024  # v7x: 64 MiB physical VMEM


def _pick_row_block(n_rows: int, row_bytes: int, sublane: int, target_bytes: int) -> int:
    """Largest row block <= ~target_bytes (multiple of `sublane`), or all rows."""
    if n_rows * row_bytes <= target_bytes:
        return n_rows                        # full extent is always a legal block
    tb = (target_bytes // row_bytes) // sublane * sublane
    return int(max(sublane, min(tb, n_rows)))


def _sublane(dtype):
    return 16 if jnp.dtype(dtype) == jnp.dtype(jnp.bfloat16) else 8


def _const_spec(shape):
    """BlockSpec for a grid-invariant (resident) operand on a 1-D grid."""
    nd = len(shape)
    return pl.BlockSpec(shape, lambda i, _nd=nd: (0,) * _nd)
    # NOTE: pipeline_mode=pl.Buffered(1) would halve the resident-buffer VMEM;
    # negligible at these sizes so left at the default double buffer.


def _layer_norm(h, gamma, beta, eps: float = 1e-5):
    mean = jnp.mean(h, axis=-1, keepdims=True)
    var = jnp.mean(jnp.square(h - mean), axis=-1, keepdims=True)
    return (h - mean) * jax.lax.rsqrt(var + eps) * gamma + beta


# ----------------------------------------------------------------------------
# Kernel 1: fused PE add + three (Linear + LayerNorm + ReLU) temporal layers
# ----------------------------------------------------------------------------
def _temporal_stack_kernel(n_layers, x_ref, pe_ref, *refs):
    o_ref = refs[-1]
    h = x_ref[...] + pe_ref[...]                      # compute dtype, [tb, S*F]
    for i in range(n_layers):
        w_ref, b_ref, g_ref, t_ref = refs[4 * i:4 * i + 4]
        z = jnp.dot(h, w_ref[...], preferred_element_type=jnp.float32) + b_ref[...]
        z = jnp.maximum(_layer_norm(z, g_ref[...], t_ref[...]), 0.0)
        h = z.astype(w_ref.dtype)                     # back to compute dtype
    o_ref[...] = h.astype(o_ref.dtype)


def temporal_stack(x, pe, layers, compute_dtype):
    """x: [B, M, S, F], pe: [S, F] -> [B*M, E] (PE add + 3x Linear/LN/ReLU fused)."""
    B, M, S, F = x.shape
    N, D0 = B * M, S * F
    E = layers[-1]["w"].shape[1]
    itemsize = jnp.dtype(compute_dtype).itemsize
    target, vmem_lim = _vmem_budget()
    tb = _pick_row_block(N, max(D0, E) * itemsize, _sublane(compute_dtype), target)

    xd = x.reshape(N, D0).astype(compute_dtype)       # lane-dense (S*F) last dim
    args = [xd, pe.reshape(1, D0).astype(compute_dtype)]
    in_specs = [pl.BlockSpec((tb, D0), lambda i: (i, 0)), _const_spec((1, D0))]
    for lp in layers:
        din, dout = lp["w"].shape
        args += [lp["w"].astype(compute_dtype),
                 lp["b"].reshape(1, dout).astype(jnp.float32),
                 lp["g"].reshape(1, dout).astype(jnp.float32),
                 lp["beta"].reshape(1, dout).astype(jnp.float32)]
        in_specs += [_const_spec((din, dout)), _const_spec((1, dout)),
                     _const_spec((1, dout)), _const_spec((1, dout))]

    return pl.pallas_call(
        partial(_temporal_stack_kernel, len(layers)),
        out_shape=jax.ShapeDtypeStruct((N, E), compute_dtype),
        grid_spec=pltpu.PrefetchScalarGridSpec(
            num_scalar_prefetch=0, grid=(pl.cdiv(N, tb),),
            in_specs=in_specs,
            out_specs=pl.BlockSpec((tb, E), lambda i: (i, 0))),
        compiler_params=pltpu.CompilerParams(
            dimension_semantics=("parallel",), vmem_limit_bytes=vmem_lim),
    )(*args)


# ----------------------------------------------------------------------------
# Kernel 2: plain row-blocked Linear (used for the QKV projection)
# ----------------------------------------------------------------------------
def _linear_kernel(x_ref, w_ref, b_ref, o_ref):
    h = jnp.dot(x_ref[...], w_ref[...], preferred_element_type=jnp.float32) + b_ref[...]
    o_ref[...] = h.astype(o_ref.dtype)


def linear_rowblocked(x, w, b, compute_dtype):
    N, Din = x.shape
    Dout = w.shape[1]
    itemsize = jnp.dtype(compute_dtype).itemsize
    target, vmem_lim = _vmem_budget()
    tb = _pick_row_block(N, max(Din, Dout) * itemsize, _sublane(compute_dtype), target)
    return pl.pallas_call(
        _linear_kernel,
        out_shape=jax.ShapeDtypeStruct((N, Dout), compute_dtype),
        grid_spec=pltpu.PrefetchScalarGridSpec(
            num_scalar_prefetch=0, grid=(pl.cdiv(N, tb),),
            in_specs=[pl.BlockSpec((tb, Din), lambda i: (i, 0)),
                      _const_spec((Din, Dout)),
                      _const_spec((1, Dout))],
            out_specs=pl.BlockSpec((tb, Dout), lambda i: (i, 0))),
        compiler_params=pltpu.CompilerParams(
            dimension_semantics=("parallel",), vmem_limit_bytes=vmem_lim),
    )(x.astype(compute_dtype), w.astype(compute_dtype),
      b.reshape(1, Dout).astype(jnp.float32))


# ----------------------------------------------------------------------------
# Kernel 3: masked multi-head attention core (scores / softmax / PV) per batch
# ----------------------------------------------------------------------------
def _attention_kernel(num_heads, qkv_ref, neg_ref, o_ref):
    qkv = qkv_ref[0]                                  # [M, 3E] compute dtype
    m, d3 = qkv.shape
    d = d3 // 3
    dh = d // num_heads
    scale = 1.0 / math.sqrt(dh)
    neg = neg_ref[...]                                # [M, M] additive mask (f32)

    outs = []
    for h in range(num_heads):                        # static unrolled head loop
        q = qkv[:, h * dh:(h + 1) * dh]
        k = qkv[:, d + h * dh:d + (h + 1) * dh]
        v = qkv[:, 2 * d + h * dh:2 * d + (h + 1) * dh]
        # Contract last axes directly -> no per-head XLU transpose of k.
        s = jax.lax.dot_general(q, k, (((1,), (1,)), ((), ())),
                                preferred_element_type=jnp.float32) * scale + neg
        s = s - jnp.max(s, axis=-1, keepdims=True)
        e = jnp.exp(s)
        p = e * pl.reciprocal(jnp.sum(e, axis=-1, keepdims=True), approx=True)
        outs.append(jnp.dot(p.astype(v.dtype), v, preferred_element_type=jnp.float32))
    attn = jnp.concatenate(outs, axis=-1)             # [M, E]; Wo applied later
    o_ref[0] = attn.astype(o_ref.dtype)


def spatial_attention(qkv, neg, num_heads, compute_dtype):
    """qkv: [B, M, 3E]; neg: [M, M] additive mask -> concatenated heads [B, M, E]."""
    B, M, E3 = qkv.shape
    E = E3 // 3
    _, vmem_lim = _vmem_budget()
    return pl.pallas_call(
        partial(_attention_kernel, num_heads),
        out_shape=jax.ShapeDtypeStruct((B, M, E), compute_dtype),
        grid_spec=pltpu.PrefetchScalarGridSpec(
            num_scalar_prefetch=0, grid=(B,),
            in_specs=[pl.BlockSpec((1, M, E3), lambda b: (b, 0, 0)),
                      pl.BlockSpec((M, M), lambda b: (0, 0))],
            out_specs=pl.BlockSpec((1, M, E), lambda b: (b, 0, 0))),
        compiler_params=pltpu.CompilerParams(
            dimension_semantics=("parallel",), vmem_limit_bytes=vmem_lim),
    )(qkv, neg)


# ----------------------------------------------------------------------------
# Kernel 4: output projection + residual/LN1 + FFN + residual/LN2 (row-blocked)
# ----------------------------------------------------------------------------
def _attn_out_ffn_kernel(x_ref, a_ref, wo_ref, bo_ref, g1_ref, t1_ref,
                         wf1_ref, bf1_ref, wf2_ref, bf2_ref, g2_ref, t2_ref, o_ref):
    a = jnp.dot(a_ref[...], wo_ref[...], preferred_element_type=jnp.float32) + bo_ref[...]
    h1 = _layer_norm(x_ref[...].astype(jnp.float32) + a, g1_ref[...], t1_ref[...])
    f = jnp.maximum(
        jnp.dot(h1.astype(wf1_ref.dtype), wf1_ref[...],
                preferred_element_type=jnp.float32) + bf1_ref[...], 0.0)
    f = jnp.dot(f.astype(wf2_ref.dtype), wf2_ref[...],
                preferred_element_type=jnp.float32) + bf2_ref[...]
    h2 = _layer_norm(h1 + f, g2_ref[...], t2_ref[...])
    o_ref[...] = h2.astype(o_ref.dtype)


def attn_out_ffn(x2d, attn2d, p, compute_dtype):
    N, E = x2d.shape
    Fh = p["wf1"].shape[1]
    itemsize = jnp.dtype(compute_dtype).itemsize
    target, vmem_lim = _vmem_budget()
    tb = _pick_row_block(N, max(E, Fh) * itemsize, _sublane(compute_dtype), target)
    f32 = jnp.float32
    return pl.pallas_call(
        _attn_out_ffn_kernel,
        out_shape=jax.ShapeDtypeStruct((N, E), compute_dtype),
        grid_spec=pltpu.PrefetchScalarGridSpec(
            num_scalar_prefetch=0, grid=(pl.cdiv(N, tb),),
            in_specs=[pl.BlockSpec((tb, E), lambda i: (i, 0)),
                      pl.BlockSpec((tb, E), lambda i: (i, 0)),
                      _const_spec((E, E)), _const_spec((1, E)),
                      _const_spec((1, E)), _const_spec((1, E)),
                      _const_spec((E, Fh)), _const_spec((1, Fh)),
                      _const_spec((Fh, E)), _const_spec((1, E)),
                      _const_spec((1, E)), _const_spec((1, E))],
            out_specs=pl.BlockSpec((tb, E), lambda i: (i, 0))),
        compiler_params=pltpu.CompilerParams(
            dimension_semantics=("parallel",), vmem_limit_bytes=vmem_lim),
    )(x2d.astype(compute_dtype), attn2d.astype(compute_dtype),
      p["wo"].astype(compute_dtype), p["bo"].reshape(1, E).astype(f32),
      p["g1"].reshape(1, E).astype(f32), p["b1"].reshape(1, E).astype(f32),
      p["wf1"].astype(compute_dtype), p["bf1"].reshape(1, Fh).astype(f32),
      p["wf2"].astype(compute_dtype), p["bf2"].reshape(1, E).astype(f32),
      p["g2"].reshape(1, E).astype(f32), p["b2"].reshape(1, E).astype(f32))


def encoder_layer(h2d, neg, p, num_heads, B, M, compute_dtype):
    """One Trafficformer encoder layer on h2d: [B*M, E] -> [B*M, E]."""
    N, E = h2d.shape
    qkv = linear_rowblocked(h2d, p["wqkv"], p["bqkv"], compute_dtype)      # [N, 3E]
    attn = spatial_attention(qkv.reshape(B, M, 3 * E), neg, num_heads,
                             compute_dtype)                                # [B, M, E]
    return attn_out_ffn(h2d, attn.reshape(N, E), p, compute_dtype)         # [N, E]


# ----------------------------------------------------------------------------
# Kernel 5: SpeedPredictorMLP (Linear + LN + ReLU, then a VPU reduction)
# ----------------------------------------------------------------------------
def _predictor_kernel(x_ref, w1_ref, b1_ref, g_ref, t_ref, w2_ref, b2_ref, o_ref):
    h = jnp.dot(x_ref[...], w1_ref[...], preferred_element_type=jnp.float32) + b1_ref[...]
    h = jnp.maximum(_layer_norm(h, g_ref[...], t_ref[...]), 0.0)
    # Final [H] -> 1 projection as a reduction (avoids a 1-wide MXU matmul).
    y = jnp.sum(h * w2_ref[...], axis=-1, keepdims=True) + b2_ref[...]
    o_ref[...] = y.astype(o_ref.dtype)
    # TODO(synk): a fully lane-dense [N/128,128] output layout needs N padded to a
    # multiple of 128; kept the natural width-1 store at these small sizes.


def speed_predictor(x2d, w1, b1, gamma, beta, w2, b2, compute_dtype):
    N, Din = x2d.shape
    H = w1.shape[1]
    itemsize = jnp.dtype(compute_dtype).itemsize
    target, vmem_lim = _vmem_budget()
    tb = _pick_row_block(N, max(Din, H) * itemsize, _sublane(compute_dtype), target)
    f32 = jnp.float32
    out = pl.pallas_call(
        _predictor_kernel,
        out_shape=jax.ShapeDtypeStruct((N, 1), jnp.float32),
        grid_spec=pltpu.PrefetchScalarGridSpec(
            num_scalar_prefetch=0, grid=(pl.cdiv(N, tb),),
            in_specs=[pl.BlockSpec((tb, Din), lambda i: (i, 0)),
                      _const_spec((Din, H)), _const_spec((1, H)),
                      _const_spec((1, H)), _const_spec((1, H)),
                      _const_spec((1, H)), _const_spec((1, 1))],
            out_specs=pl.BlockSpec((tb, 1), lambda i: (i, 0))),
        compiler_params=pltpu.CompilerParams(
            dimension_semantics=("parallel",), vmem_limit_bytes=vmem_lim),
    )(x2d.astype(compute_dtype), w1.astype(compute_dtype),
      b1.reshape(1, H).astype(f32), gamma.reshape(1, H).astype(f32),
      beta.reshape(1, H).astype(f32), w2.reshape(1, H).astype(f32),
      b2.reshape(1, 1).astype(f32))
    return out[:, 0]


# ----------------------------------------------------------------------------
# Parameter init (PyTorch-like Linear init, LayerNorm gamma=1 / beta=0)
# ----------------------------------------------------------------------------
def _linear_init(key, din, dout):
    kw, kb = jax.random.split(key)
    bound = 1.0 / math.sqrt(din)
    w = jax.random.uniform(kw, (din, dout), jnp.float32, -bound, bound)
    b = jax.random.uniform(kb, (dout,), jnp.float32, -bound, bound)
    return w, b


def init_trafficformer(key, seq_len, num_features, embedding_dim, num_heads,
                       num_layers, ff_hidden_dim=None):
    E = embedding_dim
    Fh = ff_hidden_dim or 2 * E
    params = {"pe": build_positional_encoding(seq_len, num_features)}

    dims = [seq_len * num_features, E, E, E]   # hidden_dims=(E, E) per Trafficformer
    temporal = []
    for i in range(len(dims) - 1):
        key, sub = jax.random.split(key)
        w, b = _linear_init(sub, dims[i], dims[i + 1])
        temporal.append({"w": w, "b": b,
                         "g": jnp.ones((dims[i + 1],), jnp.float32),
                         "beta": jnp.zeros((dims[i + 1],), jnp.float32)})
    params["temporal"] = temporal

    encoder = []
    for _ in range(num_layers):
        key, k1, k2, k3, k4 = jax.random.split(key, 5)
        wqkv, bqkv = _linear_init(k1, E, 3 * E)
        wo, bo = _linear_init(k2, E, E)
        wf1, bf1 = _linear_init(k3, E, Fh)
        wf2, bf2 = _linear_init(k4, Fh, E)
        encoder.append({
            "wqkv": wqkv, "bqkv": bqkv, "wo": wo, "bo": bo,
            "g1": jnp.ones((E,), jnp.float32), "b1": jnp.zeros((E,), jnp.float32),
            "wf1": wf1, "bf1": bf1, "wf2": wf2, "bf2": bf2,
            "g2": jnp.ones((E,), jnp.float32), "b2": jnp.zeros((E,), jnp.float32),
        })
    params["encoder"] = encoder

    key, k1, k2 = jax.random.split(key, 3)
    w1, b1 = _linear_init(k1, E, E)
    w2, b2 = _linear_init(k2, E, 1)
    params["predictor"] = {"w1": w1, "b1": b1,
                           "g": jnp.ones((E,), jnp.float32),
                           "beta": jnp.zeros((E,), jnp.float32),
                           "w2": w2, "b2": b2}
    return params


# ----------------------------------------------------------------------------
# Full forward built from Pallas kernels, plus a pure-JAX reference
# ----------------------------------------------------------------------------
def trafficformer_forward(params, x, spatial_mask, num_heads,
                          compute_dtype=jnp.float32):
    B, M, S, F = x.shape
    E = params["temporal"][-1]["w"].shape[1]

    # PE add fused with the full temporal MLP stack (one kernel).
    h2d = temporal_stack(x, params["pe"], params["temporal"], compute_dtype)  # [B*M, E]

    # Additive attention mask precomputed once in the wrapper.
    if spatial_mask is None:
        neg = jnp.zeros((M, M), jnp.float32)
    else:
        neg = jnp.where(spatial_mask.astype(jnp.float32) > 0, 0.0, -1e30)
    neg = neg.astype(jnp.float32)

    for lp in params["encoder"]:
        h2d = encoder_layer(h2d, neg, lp, num_heads, B, M, compute_dtype)

    pp = params["predictor"]
    out = speed_predictor(h2d, pp["w1"], pp["b1"], pp["g"], pp["beta"],
                          pp["w2"], pp["b2"], compute_dtype)
    return out.reshape(B, M)


def trafficformer_reference(params, x, spatial_mask, num_heads):
    B, M, S, F = x.shape
    h = (x + params["pe"][None, None]).reshape(B * M, S * F)
    for lp in params["temporal"]:
        h = jnp.maximum(_layer_norm(h @ lp["w"] + lp["b"], lp["g"], lp["beta"]), 0.0)
    E = params["temporal"][-1]["w"].shape[1]
    h = h.reshape(B, M, E)

    mask = (jnp.ones((M, M), jnp.float32) if spatial_mask is None
            else spatial_mask.astype(jnp.float32))
    neg = jnp.where(mask > 0, 0.0, -1e30)
    dh = E // num_heads
    for lp in params["encoder"]:
        qkv = h @ lp["wqkv"] + lp["bqkv"]
        q, k, v = jnp.split(qkv, 3, axis=-1)
        q = q.reshape(B, M, num_heads, dh).transpose(0, 2, 1, 3)
        k = k.reshape(B, M, num_heads, dh).transpose(0, 2, 1, 3)
        v = v.reshape(B, M, num_heads, dh).transpose(0, 2, 1, 3)
        s = jnp.einsum("bhqd,bhkd->bhqk", q, k) / math.sqrt(dh) + neg
        p = jax.nn.softmax(s, axis=-1)
        a = jnp.einsum("bhqk,bhkd->bhqd", p, v).transpose(0, 2, 1, 3).reshape(B, M, E)
        a = a @ lp["wo"] + lp["bo"]
        h1 = _layer_norm(h + a, lp["g1"], lp["b1"])
        f = jnp.maximum(h1 @ lp["wf1"] + lp["bf1"], 0.0) @ lp["wf2"] + lp["bf2"]
        h = _layer_norm(h1 + f, lp["g2"], lp["b2"])

    pp = params["predictor"]
    z = h.reshape(B * M, E)
    z = jnp.maximum(_layer_norm(z @ pp["w1"] + pp["b1"], pp["g"], pp["beta"]), 0.0)
    z = z @ pp["w2"] + pp["b2"]
    return z.reshape(B, M)


if __name__ == "__main__":
    # Small shapes consistent with the module: S*F = 256 (lane-dense), E = 128.
    batch, num_meters, seq_len, num_features = 2, 16, 8, 32
    embedding_dim, num_heads, num_layers = 128, 4, 2

    key = jax.random.PRNGKey(0)
    kx, km, kp = jax.random.split(key, 3)
    x = jax.random.normal(kx, (batch, num_meters, seq_len, num_features), jnp.float32)

    # Random symmetric spatial adjacency with self-loops (1 = connected).
    mask = (jax.random.uniform(km, (num_meters, num_meters)) > 0.4).astype(jnp.float32)
    mask = jnp.maximum(jnp.maximum(mask, mask.T), jnp.eye(num_meters, dtype=jnp.float32))

    params = init_trafficformer(kp, seq_len, num_features, embedding_dim,
                                num_heads, num_layers)

    # 1) Full forward (f32 compute) vs pure-JAX reference.
    out = jax.block_until_ready(
        trafficformer_forward(params, x, mask, num_heads, compute_dtype=jnp.float32))
    ref = trafficformer_reference(params, x, mask, num_heads)
    assert out.shape == (batch, num_meters)
    err = float(jnp.max(jnp.abs(out - ref)))
    assert jnp.allclose(out, ref, atol=5e-3, rtol=5e-3), f"f32 max abs err {err}"

    # 2) bf16 compute path (v6e/v7x feedback): must run clean and stay close.
    out_bf16 = jax.block_until_ready(
        trafficformer_forward(params, x, mask, num_heads, compute_dtype=jnp.bfloat16))
    assert bool(jnp.all(jnp.isfinite(out_bf16))), "bf16 path produced non-finite values"
    err_bf16 = float(jnp.max(jnp.abs(out_bf16 - ref)))
    assert err_bf16 < 0.35, f"bf16 max abs err {err_bf16}"

    print("KERNEL_OK")
</pallas_src>

<mosaic_0001>
module attributes {stable_mosaic.version = 11 : i64} {
  func.func @_temporal_stack_kernel(%arg0: i32, %arg1: memref<32x256xf32, #tpu.memory_space<vmem>>, %arg2: memref<1x256xf32, #tpu.memory_space<vmem>>, %arg3: memref<256x128xf32, #tpu.memory_space<vmem>>, %arg4: memref<1x128xf32, #tpu.memory_space<vmem>>, %arg5: memref<1x128xf32, #tpu.memory_space<vmem>>, %arg6: memref<1x128xf32, #tpu.memory_space<vmem>>, %arg7: memref<128x128xf32, #tpu.memory_space<vmem>>, %arg8: memref<1x128xf32, #tpu.memory_space<vmem>>, %arg9: memref<1x128xf32, #tpu.memory_space<vmem>>, %arg10: memref<1x128xf32, #tpu.memory_space<vmem>>, %arg11: memref<128x128xf32, #tpu.memory_space<vmem>>, %arg12: memref<1x128xf32, #tpu.memory_space<vmem>>, %arg13: memref<1x128xf32, #tpu.memory_space<vmem>>, %arg14: memref<1x128xf32, #tpu.memory_space<vmem>>, %arg15: memref<32x128xf32, #tpu.memory_space<vmem>>) attributes {dimension_semantics = [#tpu.dimension_semantics<parallel>], iteration_bounds = array<i64: 1>, scalar_prefetch = 0 : i64, scratch_operands = 0 : i64, tpu.core_type = #tpu.core_type<tc>, window_params = [{transform_indices = @transform_0, window_bounds = array<i64: 32, 256>}, {pipeline_mode = #tpu.pipeline_mode<synchronous>, transform_indices = @transform_1, window_bounds = array<i64: 1, 256>}, {pipeline_mode = #tpu.pipeline_mode<synchronous>, transform_indices = @transform_2, window_bounds = array<i64: 256, 128>}, {pipeline_mode = #tpu.pipeline_mode<synchronous>, transform_indices = @transform_3, window_bounds = array<i64: 1, 128>}, {pipeline_mode = #tpu.pipeline_mode<synchronous>, transform_indices = @transform_4, window_bounds = array<i64: 1, 128>}, {pipeline_mode = #tpu.pipeline_mode<synchronous>, transform_indices = @transform_5, window_bounds = array<i64: 1, 128>}, {pipeline_mode = #tpu.pipeline_mode<synchronous>, transform_indices = @transform_6, window_bounds = array<i64: 128, 128>}, {pipeline_mode = #tpu.pipeline_mode<synchronous>, transform_indices = @transform_7, window_bounds = array<i64: 1, 128>}, {pipeline_mode = #tpu.pipeline_mode<synchronous>, transform_indices = @transform_8, window_bounds = array<i64: 1, 128>}, {pipeline_mode = #tpu.pipeline_mode<synchronous>, transform_indices = @transform_9, window_bounds = array<i64: 1, 128>}, {pipeline_mode = #tpu.pipeline_mode<synchronous>, transform_indices = @transform_10, window_bounds = array<i64: 128, 128>}, {pipeline_mode = #tpu.pipeline_mode<synchronous>, transform_indices = @transform_11, window_bounds = array<i64: 1, 128>}, {pipeline_mode = #tpu.pipeline_mode<synchronous>, transform_indices = @transform_12, window_bounds = array<i64: 1, 128>}, {pipeline_mode = #tpu.pipeline_mode<synchronous>, transform_indices = @transform_13, window_bounds = array<i64: 1, 128>}, {transform_indices = @transform_14, window_bounds = array<i64: 32, 128>}]} {
    %c0 = arith.constant 0 : index
    %c0_0 = arith.constant 0 : index
    %0 = vector.load %arg1[%c0, %c0_0] : memref<32x256xf32, #tpu.memory_space<vmem>>, vector<32x256xf32>
    %c0_1 = arith.constant 0 : index
    %c0_2 = arith.constant 0 : index
    %1 = vector.load %arg2[%c0_1, %c0_2] : memref<1x256xf32, #tpu.memory_space<vmem>>, vector<1x256xf32>
    %2 = vector.broadcast %1 : vector<1x256xf32> to vector<32x256xf32>
    %3 = arith.addf %0, %2 : vector<32x256xf32>
    %c0_3 = arith.constant 0 : index
    %c0_4 = arith.constant 0 : index
    %4 = vector.load %arg3[%c0_3, %c0_4] : memref<256x128xf32, #tpu.memory_space<vmem>>, vector<256x128xf32>
    %cst = arith.constant dense<0.000000e+00> : vector<32x128xf32>
    %5 = tpu.matmul %3, %4, %cst {dimension_numbers = #tpu.dot_dimension_numbers<[1], [0], [0], [1], [0, 0, 1, 1], [], []>} : vector<32x256xf32>, vector<256x128xf32>, vector<32x128xf32> -> vector<32x128xf32>
    %c0_5 = arith.constant 0 : index
    %c0_6 = arith.constant 0 : index
    %6 = vector.load %arg4[%c0_5, %c0_6] : memref<1x128xf32, #tpu.memory_space<vmem>>, vector<1x128xf32>
    %7 = vector.broadcast %6 : vector<1x128xf32> to vector<32x128xf32>
    %8 = arith.addf %5, %7 : vector<32x128xf32>
    %c0_7 = arith.constant 0 : index
    %c0_8 = arith.constant 0 : index
    %9 = vector.load %arg5[%c0_7, %c0_8] : memref<1x128xf32, #tpu.memory_space<vmem>>, vector<1x128xf32>
    %c0_9 = arith.constant 0 : index
    %c0_10 = arith.constant 0 : index
    %10 = vector.load %arg6[%c0_9, %c0_10] : memref<1x128xf32, #tpu.memory_space<vmem>>, vector<1x128xf32>
    %cst_11 = arith.constant dense<0.000000e+00> : vector<32xf32>
    %11 = vector.multi_reduction <add>, %8, %cst_11 [1] : vector<32x128xf32> to vector<32xf32>
    %12 = vector.shape_cast %11 : vector<32xf32> to vector<32x1xf32>
    %cst_12 = arith.constant 1.280000e+02 : f32
    %13 = vector.broadcast %cst_12 : f32 to vector<32x1xf32>
    %14 = arith.divf %12, %13 : vector<32x1xf32>
    %15 = vector.broadcast %14 : vector<32x1xf32> to vector<32x128xf32>
    %16 = arith.subf %8, %15 : vector<32x128xf32>
    %17 = arith.mulf %16, %16 : vector<32x128xf32>
    %cst_13 = arith.constant dense<0.000000e+00> : vector<32xf32>
    %18 = vector.multi_reduction <add>, %17, %cst_13 [1] : vector<32x128xf32> to vector<32xf32>
    %19 = vector.shape_cast %18 : vector<32xf32> to vector<32x1xf32>
    %cst_14 = arith.constant 1.280000e+02 : f32
    %20 = vector.broadcast %cst_14 : f32 to vector<32x1xf32>
    %21 = arith.divf %19, %20 : vector<32x1xf32>
    %22 = vector.broadcast %14 : vector<32x1xf32> to vector<32x128xf32>
    %23 = arith.subf %8, %22 : vector<32x128xf32>
    %cst_15 = arith.constant 9.99999974E-6 : f32
    %24 = vector.broadcast %cst_15 : f32 to vector<32x1xf32>
    %25 = arith.addf %21, %24 : vector<32x1xf32>
    %26 = math.rsqrt %25 : vector<32x1xf32>
    %27 = vector.broadcast %26 : vector<32x1xf32> to vector<32x128xf32>
    %28 = arith.mulf %23, %27 : vector<32x128xf32>
    %29 = vector.broadcast %9 : vector<1x128xf32> to vector<32x128xf32>
    %30 = arith.mulf %28, %29 : vector<32x128xf32>
    %31 = vector.broadcast %10 : vector<1x128xf32> to vector<32x128xf32>
    %32 = arith.addf %30, %31 : vector<32x128xf32>
    %cst_16 = arith.constant 0.000000e+00 : f32
    %33 = vector.broadcast %cst_16 : f32 to vector<32x128xf32>
    %34 = arith.maximumf %32, %33 : vector<32x128xf32>
    %c0_17 = arith.constant 0 : index
    %c0_18 = arith.constant 0 : index
    %35 = vector.load %arg7[%c0_17, %c0_18] : memref<128x128xf32, #tpu.memory_space<vmem>>, vector<128x128xf32>
    %cst_19 = arith.constant dense<0.000000e+00> : vector<32x128xf32>
    %36 = tpu.matmul %34, %35, %cst_19 {dimension_numbers = #tpu.dot_dimension_numbers<[1], [0], [0], [1], [0, 0, 1, 1], [], []>} : vector<32x128xf32>, vector<128x128xf32>, vector<32x128xf32> -> vector<32x128xf32>
    %c0_20 = arith.constant 0 : index
    %c0_21 = arith.constant 0 : index
    %37 = vector.load %arg8[%c0_20, %c0_21] : memref<1x128xf32, #tpu.memory_space<vmem>>, vector<1x128xf32>
    %38 = vector.broadcast %37 : vector<1x128xf32> to vector<32x128xf32>
    %39 = arith.addf %36, %38 : vector<32x128xf32>
    %c0_22 = arith.constant 0 : index
    %c0_23 = arith.constant 0 : index
    %40 = vector.load %arg9[%c0_22, %c0_23] : memref<1x128xf32, #tpu.memory_space<vmem>>, vector<1x128xf32>
    %c0_24 = arith.constant 0 : index
    %c0_25 = arith.constant 0 : index
    %41 = vector.load %arg10[%c0_24, %c0_25] : memref<1x128xf32, #tpu.memory_space<vmem>>, vector<1x128xf32>
    %cst_26 = arith.constant dense<0.000000e+00> : vector<32xf32>
    %42 = vector.multi_reduction <add>, %39, %cst_26 [1] : vector<32x128xf32> to vector<32xf32>
    %43 = vector.shape_cast %42 : vector<32xf32> to vector<32x1xf32>
    %cst_27 = arith.constant 1.280000e+02 : f32
    %44 = vector.broadcast %cst_27 : f32 to vector<32x1xf32>
    %45 = arith.divf %43, %44 : vector<32x1xf32>
    %46 = vector.broadcast %45 : vector<32x1xf32> to vector<32x128xf32>
    %47 = arith.subf %39, %46 : vector<32x128xf32>
    %48 = arith.mulf %47, %47 : vector<32x128xf32>
    %cst_28 = arith.constant dense<0.000000e+00> : vector<32xf32>
    %49 = vector.multi_reduction <add>, %48, %cst_28 [1] : vector<32x128xf32> to vector<32xf32>
    %50 = vector.shape_cast %49 : vector<32xf32> to vector<32x1xf32>
    %cst_29 = arith.constant 1.280000e+02 : f32
    %51 = vector.broadcast %cst_29 : f32 to vector<32x1xf32>
    %52 = arith.divf %50, %51 : vector<32x1xf32>
    %53 = vector.broadcast %45 : vector<32x1xf32> to vector<32x128xf32>
    %54 = arith.subf %39, %53 : vector<32x128xf32>
    %cst_30 = arith.constant 9.99999974E-6 : f32
    %55 = vector.broadcast %cst_30 : f32 to vector<32x1xf32>
    %56 = arith.addf %52, %55 : vector<32x1xf32>
    %57 = math.rsqrt %56 : vector<32x1xf32>
    %58 = vector.broadcast %57 : vector<32x1xf32> to vector<32x128xf32>
    %59 = arith.mulf %54, %58 : vector<32x128xf32>
    %60 = vector.broadcast %40 : vector<1x128xf32> to vector<32x128xf32>
    %61 = arith.mulf %59, %60 : vector<32x128xf32>
    %62 = vector.broadcast %41 : vector<1x128xf32> to vector<32x128xf32>
    %63 = arith.addf %61, %62 : vector<32x128xf32>
    %cst_31 = arith.constant 0.000000e+00 : f32
    %64 = vector.broadcast %cst_31 : f32 to vector<32x128xf32>
    %65 = arith.maximumf %63, %64 : vector<32x128xf32>
    %c0_32 = arith.constant 0 : index
    %c0_33 = arith.constant 0 : index
    %66 = vector.load %arg11[%c0_32, %c0_33] : memref<128x128xf32, #tpu.memory_space<vmem>>, vector<128x128xf32>
    %cst_34 = arith.constant dense<0.000000e+00> : vector<32x128xf32>
    %67 = tpu.matmul %65, %66, %cst_34 {dimension_numbers = #tpu.dot_dimension_numbers<[1], [0], [0], [1], [0, 0, 1, 1], [], []>} : vector<32x128xf32>, vector<128x128xf32>, vector<32x128xf32> -> vector<32x128xf32>
    %c0_35 = arith.constant 0 : index
    %c0_36 = arith.constant 0 : index
    %68 = vector.load %arg12[%c0_35, %c0_36] : memref<1x128xf32, #tpu.memory_space<vmem>>, vector<1x128xf32>
    %69 = vector.broadcast %68 : vector<1x128xf32> to vector<32x128xf32>
    %70 = arith.addf %67, %69 : vector<32x128xf32>
    %c0_37 = arith.constant 0 : index
    %c0_38 = arith.constant 0 : index
    %71 = vector.load %arg13[%c0_37, %c0_38] : memref<1x128xf32, #tpu.memory_space<vmem>>, vector<1x128xf32>
    %c0_39 = arith.constant 0 : index
    %c0_40 = arith.constant 0 : index
    %72 = vector.load %arg14[%c0_39, %c0_40] : memref<1x128xf32, #tpu.memory_space<vmem>>, vector<1x128xf32>
    %cst_41 = arith.constant dense<0.000000e+00> : vector<32xf32>
    %73 = vector.multi_reduction <add>, %70, %cst_41 [1] : vector<32x128xf32> to vector<32xf32>
    %74 = vector.shape_cast %73 : vector<32xf32> to vector<32x1xf32>
    %cst_42 = arith.constant 1.280000e+02 : f32
    %75 = vector.broadcast %cst_42 : f32 to vector<32x1xf32>
    %76 = arith.divf %74, %75 : vector<32x1xf32>
    %77 = vector.broadcast %76 : vector<32x1xf32> to vector<32x128xf32>
    %78 = arith.subf %70, %77 : vector<32x128xf32>
    %79 = arith.mulf %78, %78 : vector<32x128xf32>
    %cst_43 = arith.constant dense<0.000000e+00> : vector<32xf32>
    %80 = vector.multi_reduction <add>, %79, %cst_43 [1] : vector<32x128xf32> to vector<32xf32>
    %81 = vector.shape_cast %80 : vector<32xf32> to vector<32x1xf32>
    %cst_44 = arith.constant 1.280000e+02 : f32
    %82 = vector.broadcast %cst_44 : f32 to vector<32x1xf32>
    %83 = arith.divf %81, %82 : vector<32x1xf32>
    %84 = vector.broadcast %76 : vector<32x1xf32> to vector<32x128xf32>
    %85 = arith.subf %70, %84 : vector<32x128xf32>
    %cst_45 = arith.constant 9.99999974E-6 : f32
    %86 = vector.broadcast %cst_45 : f32 to vector<32x1xf32>
    %87 = arith.addf %83, %86 : vector<32x1xf32>
    %88 = math.rsqrt %87 : vector<32x1xf32>
    %89 = vector.broadcast %88 : vector<32x1xf32> to vector<32x128xf32>
    %90 = arith.mulf %85, %89 : vector<32x128xf32>
    %91 = vector.broadcast %71 : vector<1x128xf32> to vector<32x128xf32>
    %92 = arith.mulf %90, %91 : vector<32x128xf32>
    %93 = vector.broadcast %72 : vector<1x128xf32> to vector<32x128xf32>
    %94 = arith.addf %92, %93 : vector<32x128xf32>
    %cst_46 = arith.constant 0.000000e+00 : f32
    %95 = vector.broadcast %cst_46 : f32 to vector<32x128xf32>
    %96 = arith.maximumf %94, %95 : vector<32x128xf32>
    %c0_47 = arith.constant 0 : index
    %c0_48 = arith.constant 0 : index
    %97 = vector.load %arg15[%c0_47, %c0_48] : memref<32x128xf32, #tpu.memory_space<vmem>>, vector<32x128xf32>
    tpu.vector_store %arg15[%c0_47, %c0_48], %96 {strides = array<i32>} : memref<32x128xf32, #tpu.memory_space<vmem>>, vector<32x128xf32>,
    return
  }
  func.func @transform_0(%arg0: i32) -> (i32, i32) {
    %c0_i32 = arith.constant 0 : i32
    %c0_i32_0 = arith.constant 0 : i32
    return %arg0, %c0_i32 : i32, i32
  }
  func.func @transform_1(%arg0: i32) -> (i32, i32) {
    %c0_i32 = arith.constant 0 : i32
    %c0_i32_0 = arith.constant 0 : i32
    %c0_i32_1 = arith.constant 0 : i32
    return %c0_i32, %c0_i32_0 : i32, i32
  }
  func.func @transform_2(%arg0: i32) -> (i32, i32) {
    %c0_i32 = arith.constant 0 : i32
    %c0_i32_0 = arith.constant 0 : i32
    %c0_i32_1 = arith.constant 0 : i32
    return %c0_i32, %c0_i32_0 : i32, i32
  }
  func.func @transform_3(%arg0: i32) -> (i32, i32) {
    %c0_i32 = arith.constant 0 : i32
    %c0_i32_0 = arith.constant 0 : i32
    %c0_i32_1 = arith.constant 0 : i32
    return %c0_i32, %c0_i32_0 : i32, i32
  }
  func.func @transform_4(%arg0: i32) -> (i32, i32) {
    %c0_i32 = arith.constant 0 : i32
    %c0_i32_0 = arith.constant 0 : i32
    %c0_i32_1 = arith.constant 0 : i32
    return %c0_i32, %c0_i32_0 : i32, i32
  }
  func.func @transform_5(%arg0: i32) -> (i32, i32) {
    %c0_i32 = arith.constant 0 : i32
    %c0_i32_0 = arith.constant 0 : i32
    %c0_i32_1 = arith.constant 0 : i32
    return %c0_i32, %c0_i32_0 : i32, i32
  }
  func.func @transform_6(%arg0: i32) -> (i32, i32) {
    %c0_i32 = arith.constant 0 : i32
    %c0_i32_0 = arith.constant 0 : i32
    %c0_i32_1 = arith.constant 0 : i32
    return %c0_i32, %c0_i32_0 : i32, i32
  }
  func.func @transform_7(%arg0: i32) -> (i32, i32) {
    %c0_i32 = arith.constant 0 : i32
    %c0_i32_0 = arith.constant 0 : i32
    %c0_i32_1 = arith.constant 0 : i32
    return %c0_i32, %c0_i32_0 : i32, i32
  }
  func.func @transform_8(%arg0: i32) -> (i32, i32) {
    %c0_i32 = arith.constant 0 : i32
    %c0_i32_0 = arith.constant 0 : i32
    %c0_i32_1 = arith.constant 0 : i32
    return %c0_i32, %c0_i32_0 : i32, i32
  }
  func.func @transform_9(%arg0: i32) -> (i32, i32) {
    %c0_i32 = arith.constant 0 : i32
    %c0_i32_0 = arith.constant 0 : i32
    %c0_i32_1 = arith.constant 0 : i32
    return %c0_i32, %c0_i32_0 : i32, i32
  }
  func.func @transform_10(%arg0: i32) -> (i32, i32) {
    %c0_i32 = arith.constant 0 : i32
    %c0_i32_0 = arith.constant 0 : i32
    %c0_i32_1 = arith.constant 0 : i32
    return %c0_i32, %c0_i32_0 : i32, i32
  }
  func.func @transform_11(%arg0: i32) -> (i32, i32) {
    %c0_i32 = arith.constant 0 : i32
    %c0_i32_0 = arith.constant 0 : i32
    %c0_i32_1 = arith.constant 0 : i32
    return %c0_i32, %c0_i32_0 : i32, i32
  }
  func.func @transform_12(%arg0: i32) -> (i32, i32) {
    %c0_i32 = arith.constant 0 : i32
    %c0_i32_0 = arith.constant 0 : i32
    %c0_i32_1 = arith.constant 0 : i32
    return %c0_i32, %c0_i32_0 : i32, i32
  }
  func.func @transform_13(%arg0: i32) -> (i32, i32) {
    %c0_i32 = arith.constant 0 : i32
    %c0_i32_0 = arith.constant 0 : i32
    %c0_i32_1 = arith.constant 0 : i32
    return %c0_i32, %c0_i32_0 : i32, i32
  }
  func.func @transform_14(%arg0: i32) -> (i32, i32) {
    %c0_i32 = arith.constant 0 : i32
    %c0_i32_0 = arith.constant 0 : i32
    return %arg0, %c0_i32 : i32, i32
  }
}

</mosaic_0001>

<bundles_post_ra>
// kernel: tpu_custom_call.1
= control target key start
LH: loop header
LB: loop body
LE: loop exit
PB: predicated region body
PF: predicated region fallthrough
CT: control target
= control target key end

     0   :  { %19 = vsyncpa [#allocation3], 0  ;;  %s1261_s0 = inlined_call_operand.hbm [shape: f32[32,256], index: 0, kind: input, shape index: {}]   ;;  %s1262_s1 = inlined_call_operand.hbm [shape: f32[1,256], index: 1, kind: input, shape index: {}]   ;;  %s1263_s2 = inlined_call_operand.hbm [shape: f32[256,128], index: 2, kind: input, shape index: {}]   ;;  %s1264_s3 = inlined_call_operand.vmem [shape: f32[1,128], index: 3, kind: input, shape index: {}]   ;;  %s1265_s4 = inlined_call_operand.vmem [shape: f32[1,128], index: 4, kind: input, shape index: {}]   ;;  %s1266_s5 = inlined_call_operand.vmem [shape: f32[1,128], index: 5, kind: input, shape index: {}]   ;;  %s1267_s6 = inlined_call_operand.hbm [shape: f32[128,128], index: 6, kind: input, shape index: {}]   ;;  %s1268_s7 = inlined_call_operand.vmem [shape: f32[1,128], index: 7, kind: input, shape index: {}]   ;;  %s1269_s8 = inlined_call_operand.vmem [shape: f32[1,128], index: 8, kind: input, shape index: {}]   ;;  %s1270_s9 = inlined_call_operand.vmem [shape: f32[1,128], index: 9, kind: input, shape index: {}]   ;;  %s1271_s10 = inlined_call_operand.hbm [shape: f32[128,128], index: 10, kind: input, shape index: {}]   ;;  %s1272_s11 = inlined_call_operand.vmem [shape: f32[1,128], index: 11, kind: input, shape index: {}]   ;;  %s1273_s12 = inlined_call_operand.vmem [shape: f32[1,128], index: 12, kind: input, shape index: {}]   ;;  %s1274_s13 = inlined_call_operand.vmem [shape: f32[1,128], index: 13, kind: input, shape index: {}]   ;;  %s1275_s14 = inlined_call_operand.hbm [shape: f32[32,128], index: 14, kind: output, shape index: {}]  }
   0x1   :  { %20 = vsyncpa [#allocation6], 0 }
   0x2   :  { %21 = vsyncpa [#allocation9], 0 }
   0x3   :  { %22 = vsyncpa [#allocation4], 0  ;;  %s1079_s29 = smov [#allocation5]  }
   0x4   :  { %s41_s30 = sshll.u32 %s1079_s29, 4  ;;  %s42_s30 = int_to_ptr.vmem [resolvable:$true] %s41_s30 }
   0x5   :  { %s959_s15 = scalar_lea.vmem %s42_s30, 32  ;;  %p964_p1 = scmp.lt.s32.totalorder %s42_s30, %s42_s30 }
   0x6   :  { %p960_p0 = scmp.ne.s32.totalorder %s42_s30, %s959_s15  ;;  %p965_p2 = scmp.lt.s32.totalorder %s959_s15, %s959_s15 }
   0x8   :  { %p966_p3 = por %p965_p2, %p964_p1 }
   0xa   :  { %p967_p4 = pnand %p966_p3, %p960_p0 }
   0xc   :  { %970 = shalt.err (!%p967_p4)
}
   0xd   :  { %44 = dma.hbm_to_vmem [thread:$0]  %s1262_s1, 32, %s42_s30, [#allocation6]  }
   0xe   :  { %s1080_s18 = smov [#allocation8]   ;;  %s1081_s20 = smov [#allocation2]  }
   0xf   :  { %s68_s19 = sshll.u32 %s1080_s18, 4  ;;  %s28_s21 = sshll.u32 %s1081_s20, 4  ;;  %s69_s19 = int_to_ptr.vmem [resolvable:$true] %s68_s19  ;;  %s29_s21 = int_to_ptr.vmem [resolvable:$true] %s28_s21 }
  0x10   :  { %s979_s22 = scalar_lea.vmem %s69_s19, 2048  ;;  %p984_p6 = scmp.lt.s32.totalorder %s69_s19, %s69_s19 }
  0x11   :  { %p980_p5 = scmp.ne.s32.totalorder %s69_s19, %s979_s22  ;;  %p985_p7 = scmp.lt.s32.totalorder %s979_s22, %s979_s22 }
  0x13   :  { %p986_p8 = por %p985_p7, %p984_p6 }
  0x15   :  { %p987_p9 = pnand %p986_p8, %p980_p5 }
  0x17   :  { %990 = shalt.err (!%p987_p9)
}
  0x18   :  { %s1082_s23 = smov 128   ;;  %s1083_s24 = smov 8  }
  0x19   :  { %74 = dma.hbm_to_vmem [thread:$0]  %s1267_s6, 2048, %s69_s19, [#allocation9], %s1082_s23, %s1082_s23, %s1083_s24  }
  0x1a   :  { %s999_s1 = scalar_lea.vmem %s29_s21, 1024  ;;  %p1004_p11 = scmp.lt.s32.totalorder %s29_s21, %s29_s21 }
  0x1b   :  { %p1000_p10 = scmp.ne.s32.totalorder %s29_s21, %s999_s1  ;;  %p1005_p12 = scmp.lt.s32.totalorder %s999_s1, %s999_s1 }
  0x1d   :  { %p1006_p13 = por %p1005_p12, %p1004_p11 }
  0x1f   :  { %p1007_p0 = pnand %p1006_p13, %p1000_p10 }
  0x21   :  { %1010 = shalt.err (!%p1007_p0)
}
  0x22   :  { %s1084_s27 = smov 256   ;;  %s1085_s28 = smov 16  }
  0x23   :  { %34 = dma.hbm_to_vmem [thread:$0]  %s1261_s0, 1024, %s29_s21, [#allocation3], %s1084_s27, %s1084_s27, %s1085_s28  }
  0x24   :  { %s1086_s15 = smov [#allocation7]   ;;  %s1087_s17 = smov [#allocation10]  }
  0x25   :  { %s50_s16 = sshll.u32 %s1086_s15, 4  ;;  %s86_s18 = sshll.u32 %s1087_s17, 4  ;;  %s51_s16 = int_to_ptr.vmem [resolvable:$true] %s50_s16  ;;  %s87_s18 = int_to_ptr.vmem [resolvable:$true] %s86_s18 }
  0x26   :  { %s1019_s6 = scalar_lea.vmem %s51_s16, 4096  ;;  %p1024_p2 = scmp.lt.s32.totalorder %s51_s16, %s51_s16 }
  0x27   :  { %p1020_p1 = scmp.ne.s32.totalorder %s51_s16, %s1019_s6  ;;  %p1025_p3 = scmp.lt.s32.totalorder %s1019_s6, %s1019_s6 }
  0x29   :  { %p1026_p4 = por %p1025_p3, %p1024_p2 }
  0x2b   :  { %p1027_p5 = pnand %p1026_p4, %p1020_p1 }
  0x2d   :  { %1030 = shalt.err (!%p1027_p5)
}
  0x2e   :  { %56 = dma.hbm_to_vmem [thread:$0]  %s1263_s2, 4096, %s51_s16, [#allocation6], %s1082_s23, %s1082_s23, %s1083_s24  }
  0x2f   :  { %s1039_s0 = scalar_lea.vmem %s87_s18, 2048  ;;  %p1044_p7 = scmp.lt.s32.totalorder %s87_s18, %s87_s18 }
  0x30   :  { %p1040_p6 = scmp.ne.s32.totalorder %s87_s18, %s1039_s0  ;;  %p1045_p8 = scmp.lt.s32.totalorder %s1039_s0, %s1039_s0 }
  0x32   :  { %p1046_p9 = por %p1045_p8, %p1044_p7 }
  0x34   :  { %p1047_p10 = pnand %p1046_p9, %p1040_p6 }
  0x36   :  { %1050 = shalt.err (!%p1047_p10)
}
  0x37   :  { %92 = dma.hbm_to_vmem [thread:$0]  %s1271_s10, 2048, %s87_s18, [#allocation9], %s1082_s23, %s1082_s23, %s1083_s24  }
  0x38   :  { %1071 = dma.done.wait [#allocation3], 1024  }
  0x39   :  { %1072 = vsyncadd [#allocation3], 4294966272 }
  0x3a   :  { %1073 = dma.done.wait [#allocation6], 4128  }
  0x3b   :  { %1074 = vsyncadd [#allocation6], 4294963168 }
  0x3c   :  { %1075 = dma.done.wait [#allocation9], 4096  }
  0x3d   :  { %1076 = vsyncadd [#allocation9], 4294963200  ;;  %v173_v0 = vld [vmem:[#allocation7 + $0xf8] sm:$0xff]  ;;  %v172_v2 = vld [vmem:[#allocation7 + $0xf0] sm:$0xff]  ;;  %v124_v3 = vlaneseq }
  0x3e   :  { %v157_v1 = vld [vmem:[#allocation7 + $0x78] sm:$0xff]  ;;  %725 = vmatprep.subr.mxu0 %v173_v0  ;;  %v156_v4 = vld [vmem:[#allocation7 + $0x70] sm:$0xff]  ;;  %v171_v5 = vld [vmem:[#allocation7 + $0xe8] sm:$0xff] }
  0x3f   :  { %726 = vmatpush3.msra.mxu0 %v157_v1  ;;  %v155_v6 = vld [vmem:[#allocation7 + $0x68] sm:$0xff]  ;;  %v170_v7 = vld [vmem:[#allocation7 + $0xe0] sm:$0xff]  ;;  %v125_v8 = vshrl.u32 %v124_v3, 7  ;;  %v169_v10 = vld [vmem:[#allocation7 + $0xd8] sm:$0xff] }
  0x40   :  { %727 = vmatprep.subr.mxu0 %v172_v2  ;;  %v154_v9 = vld [vmem:[#allocation7 + $0x60] sm:$0xff]  ;;  %v153_v11 = vld [vmem:[#allocation7 + $0x58] sm:$0xff]  ;;  %v168_v12 = vld [vmem:[#allocation7 + $0xd0] sm:$0xff] }
  0x41   :  { %728 = vmatpush3.msra.mxu0 %v156_v4  ;;  %v130_v13 = vsub.s32 1, %v125_v8  ;;  %v152_v14 = vld [vmem:[#allocation7 + $0x50] sm:$0xff]  ;;  %v167_v15 = vld [vmem:[#allocation7 + $0xc8] sm:$0xff]  ;;  %v122_v18 = vld [vmem:[#allocation5] sm:$0x3]  ;;  %v126_v31 = vsub.s32 0, %v125_v8 }
  0x42   :  { %729 = vmatprep.subr.mxu0 %v171_v5  ;;  %v151_v16 = vld [vmem:[#allocation7 + $0x48] sm:$0xff]  ;;  %v166_v19 = vld [vmem:[#allocation7 + $0xc0] sm:$0xff]  ;;  %v165_v22 = vld [vmem:[#allocation7 + $0xb8] sm:$0xff] }
  0x43   :  { %730 = vmatpush3.msra.mxu0 %v155_v6  ;;  %v115_v17 = vld [vmem:[#allocation2 + $0x8] sm:$0xff]  ;;  %v131_v20 = vrot.slane %v122_v18, %v130_v13  ;;  %v149_v24 = vld [vmem:[#allocation7 + $0x38] sm:$0xff]  ;;  %v164_v25 = vld [vmem:[#allocation7 + $0xb0] sm:$0xff]  ;;  %v127_v36 = vrot.slane %v122_v18, %v126_v31 }
  0x44   :  { %731 = vmatprep.subr.mxu0 %v170_v7  ;;  %v150_v21 = vld [vmem:[#allocation7 + $0x40] sm:$0xff]  ;;  %v148_v26 = vld [vmem:[#allocation7 + $0x30] sm:$0xff]  ;;  %v163_v27 = vld [vmem:[#allocation7 + $0xa8] sm:$0xff] }
  0x45   :  { %732 = vmatpush3.msra.mxu0 %v154_v9  ;;  %v135_v23 = vadd.f32 %v131_v20, %v115_v17  ;;  %v147_v28 = vld [vmem:[#allocation7 + $0x28] sm:$0xff]  ;;  %v162_v29 = vld [vmem:[#allocation7 + $0xa0] sm:$0xff]  ;;  %v161_v32 = vld [vmem:[#allocation7 + $0x98] sm:$0xff] }
  0x46   :  { %733 = vmatprep.subr.mxu0 %v169_v10  ;;  %v146_v30 = vld [vmem:[#allocation7 + $0x20] sm:$0xff]  ;;  %v145_v33 = vld [vmem:[#allocation7 + $0x18] sm:$0xff]  ;;  %v160_v34 = vld [vmem:[#allocation7 + $0x90] sm:$0xff] }
  0x47   :  { %734 = vmatpush3.msra.mxu0 %v153_v11  ;;  %245 = vmatprep.mubr.f32.mxu0 %v135_v23  ;;  %v144_v35 = vld [vmem:[#allocation7 + $0x10] sm:$0xff]  ;;  %v159_v37 = vld [vmem:[#allocation7 + $0x88] sm:$0xff]  ;;  %v114_v38 = vld [vmem:[#allocation2] sm:$0xff] }
  0x48   :  { %735 = vmatprep.subr.mxu0 %v168_v12  ;;  %v143_v39 = vld [vmem:[#allocation7 + $0x8] sm:$0xff]  ;;  %v117_v40 = vld [vmem:[#allocation2 + $0x18] sm:$0xff]  ;;  %v158_v41 = vld [vmem:[#allocation7 + $0x80] sm:$0xff]  ;;  %v134_v43 = vadd.f32 %v127_v36, %v114_v38 }
  0x49   :  { %736 = vmatpush3.msra.mxu0 %v152_v14  ;;  %v142_v42 = vld [vmem:[#allocation7] sm:$0xff]  ;;  %v137_v44 = vadd.f32 %v131_v20, %v117_v40  ;;  %v116_v45 = vld [vmem:[#allocation2 + $0x10] sm:$0xff]  ;;  %v121_v50 = vld [vmem:[#allocation2 + $0x38] sm:$0xff] }
  0x4a   :  { %737 = vmatprep.subr.mxu0 %v167_v15  ;;  %v119_v46 = vld [vmem:[#allocation2 + $0x28] sm:$0xff]  ;;  %v136_v47 = vadd.f32 %v127_v36, %v116_v45  ;;  %v118_v49 = vld [vmem:[#allocation2 + $0x20] sm:$0xff]  ;;  %v141_v52 = vadd.f32 %v131_v20, %v121_v50  ;;  %v120_v53 = vld [vmem:[#allocation2 + $0x30] sm:$0xff] }
  0x4b   :  { %738 = vmatpush3.msra.mxu0 %v151_v16  ;;  %v139_v48 = vadd.f32 %v131_v20, %v119_v46  ;;  %v138_v51 = vadd.f32 %v127_v36, %v118_v49  ;;  %v140_v54 = vadd.f32 %v127_v36, %v120_v53  ;;  %v716_v57 = vld [vmem:[%s1264_s3] ss:$0 sm:$0xff]  ;;  %v345_v31 = vld [vmem:[#allocation8 + $0x40] sm:$0xff]  ;;  %v338_v38 = vld [vmem:[#allocation8 + $0x8] sm:$0xff] }
  0x4c   :  { %739 = vmatprep.subr.mxu0 %v166_v19  ;;  %v352_v8 = vld [vmem:[#allocation8 + $0x78] sm:$0xff] }
  0x4d   :  { %740 = vmatpush3.msra.mxu0 %v150_v21  ;;  %809 = vmatprep.subr.mxu1 %v352_v8  ;;  %v340_v36 = vld [vmem:[#allocation8 + $0x18] sm:$0xff] }
  0x4e   :  { %741 = vmatprep.subr.mxu0 %v165_v22  ;;  %810 = vmatpush3.msra.mxu1 %v352_v8  ;;  %v717_v53 = vld [vmem:[%s1265_s4] ss:$0 sm:$0xff] }
  0x4f   :  { %742 = vmatpush3.msra.mxu0 %v149_v24  ;;  %v351_v24 = vld [vmem:[#allocation8 + $0x70] sm:$0xff] }
  0x50   :  { %743 = vmatprep.subr.mxu0 %v164_v25  ;;  %811 = vmatprep.subr.mxu1 %v351_v24 }
  0x51   :  { %744 = vmatpush3.msra.mxu0 %v148_v26  ;;  %812 = vmatpush3.msra.mxu1 %v351_v24  ;;  %v350_v26 = vld [vmem:[#allocation8 + $0x68] sm:$0xff] }
  0x52   :  { %745 = vmatprep.subr.mxu0 %v163_v27  ;;  %813 = vmatprep.subr.mxu1 %v350_v26  ;;  %v349_v27 = vld [vmem:[#allocation8 + $0x60] sm:$0xff] }
  0x53   :  { %746 = vmatpush3.msra.mxu0 %v147_v28  ;;  %814 = vmatpush3.msra.mxu1 %v350_v26  ;;  %v348_v28 = vld [vmem:[#allocation8 + $0x58] sm:$0xff] }
  0x54   :  { %747 = vmatprep.subr.mxu0 %v162_v29  ;;  %815 = vmatprep.subr.mxu1 %v349_v27  ;;  %v347_v29 = vld [vmem:[#allocation8 + $0x50] sm:$0xff] }
  0x55   :  { %748 = vmatpush3.msra.mxu0 %v146_v30  ;;  %816 = vmatpush3.msra.mxu1 %v349_v27  ;;  %v346_v30 = vld [vmem:[#allocation8 + $0x48] sm:$0xff] }
  0x56   :  { %749 = vmatprep.subr.mxu0 %v161_v32  ;;  %817 = vmatprep.subr.mxu1 %v348_v28  ;;  %v344_v32 = vld [vmem:[#allocation8 + $0x38] sm:$0xff] }
  0x57   :  { %750 = vmatpush3.msra.mxu0 %v145_v33  ;;  %818 = vmatpush3.msra.mxu1 %v348_v28  ;;  %v343_v33 = vld [vmem:[#allocation8 + $0x30] sm:$0xff] }
  0x58   :  { %751 = vmatprep.subr.mxu0 %v160_v34  ;;  %819 = vmatprep.subr.mxu1 %v347_v29  ;;  %v342_v34 = vld [vmem:[#allocation8 + $0x28] sm:$0xff] }
  0x59   :  { %752 = vmatpush3.msra.mxu0 %v144_v35  ;;  %820 = vmatpush3.msra.mxu1 %v347_v29  ;;  %v341_v35 = vld [vmem:[#allocation8 + $0x20] sm:$0xff] }
  0x5a   :  { %753 = vmatprep.subr.mxu0 %v159_v37  ;;  %821 = vmatprep.subr.mxu1 %v346_v30  ;;  %v339_v37 = vld [vmem:[#allocation8 + $0x10] sm:$0xff] }
  0x5b   :  { %754 = vmatpush3.msra.mxu0 %v143_v39  ;;  %822 = vmatpush3.msra.mxu1 %v346_v30  ;;  %v337_v39 = vld [vmem:[#allocation8] sm:$0xff] }
  0x5c   :  { %755 = vmatprep.subr.mxu0 %v158_v41  ;;  %823 = vmatprep.subr.mxu1 %v345_v31 }
  0x5d   :  { %756 = vmatpush3.msra.mxu0 %v142_v42  ;;  %824 = vmatpush3.msra.mxu1 %v345_v31 }
  0x5e   :  { %246 = vmatmul.mubr.f32.vlgmr.msra.gmra.mxu0 %v134_v43  ;;  %825 = vmatprep.subr.mxu1 %v344_v32 }
  0x5f   :  { %250 = vmatprep.mubr.f32.mxu0 %v137_v44  ;;  %826 = vmatpush3.msra.mxu1 %v344_v32 }
  0x60   :  { %827 = vmatprep.subr.mxu1 %v343_v33 }
  0x61   :  { %828 = vmatpush3.msra.mxu1 %v343_v33 }
  0x62   :  { %251 = vmatmul.mubr.f32.gmra.mxu0 %v136_v47  ;;  %829 = vmatprep.subr.mxu1 %v342_v34 }
  0x63   :  { %255 = vmatprep.mubr.f32.mxu0 %v139_v48  ;;  %830 = vmatpush3.msra.mxu1 %v342_v34 }
  0x64   :  { %831 = vmatprep.subr.mxu1 %v341_v35 }
  0x65   :  { %832 = vmatpush3.msra.mxu1 %v341_v35  ;;  %v529_v35 = vld [vmem:[#allocation10 + $0x70] sm:$0xff] }
  0x66   :  { %256 = vmatmul.mubr.f32.gmra.mxu0 %v138_v51  ;;  %833 = vmatprep.subr.mxu1 %v340_v36 }
  0x67   :  { %260 = vmatprep.mubr.f32.mxu0 %v141_v52  ;;  %834 = vmatpush3.msra.mxu1 %v340_v36 }
  0x68   :  { %835 = vmatprep.subr.mxu1 %v339_v37 }
  0x69   :  { %836 = vmatpush3.msra.mxu1 %v339_v37  ;;  %v528_v37 = vld [vmem:[#allocation10 + $0x68] sm:$0xff] }
  0x6a   :  { %261 = vmatmul.mubr.f32.gmra.mxu0 %v140_v54  ;;  %837 = vmatprep.subr.mxu1 %v338_v38 }
  0x6b   :  { %838 = vmatpush3.msra.mxu1 %v338_v38  ;;  %v527_v38 = vld [vmem:[#allocation10 + $0x60] sm:$0xff] }
  0x6c   :  { %839 = vmatprep.subr.mxu1 %v337_v39 }
  0x6d   :  { %840 = vmatpush3.msra.mxu1 %v337_v39  ;;  %v526_v39 = vld [vmem:[#allocation10 + $0x58] sm:$0xff] }
 0x11e   :  { %v757_v55 = vpop.f32.mrf.mxu0 }
 0x120   :  { %v758_v56 = vpop.f32.mrf.mxu0 }
 0x121   :  { %v759_v58 = vadd.f32 %v758_v56, %v757_v55  ;;  %v718_v55 = vld [vmem:[%s1266_s5] ss:$0 sm:$0xff] }
 0x122   :  { %v760_v59 = vpop.f32.mrf.mxu0 }
 0x123   :  { %v248_v60 = vadd.f32 %v759_v58, %v716_v57 }
 0x124   :  { %v761_v61 = vpop.f32.mrf.mxu0 }
 0x125   :  { %v762_v62 = vadd.f32 %v761_v61, %v760_v59  ;;  %268 = vadd.xlane.f32.xlu0 %v248_v60 }
 0x126   :  { %v763_v63 = vpop.f32.mrf.mxu0 }
 0x127   :  { %v253_v0 = vadd.f32 %v762_v62, %v716_v57 }
 0x128   :  { %v764_v1 = vpop.f32.mrf.mxu0 }
 0x129   :  { %v765_v2 = vadd.f32 %v764_v1, %v763_v63  ;;  %270 = vadd.xlane.f32.xlu0 %v253_v0 }
 0x12a   :  { %v766_v3 = vpop.f32.mrf.mxu0 }
 0x12b   :  { %v258_v4 = vadd.f32 %v765_v2, %v716_v57 }
 0x12c   :  { %v767_v5 = vpop.f32.mrf.mxu0 }
 0x12d   :  { %v768_v6 = vadd.f32 %v767_v5, %v766_v3  ;;  %272 = vadd.xlane.f32.xlu1 %v258_v4 }
 0x12f   :  { %v263_v7 = vadd.f32 %v768_v6, %v716_v57 }
 0x131   :  { %274 = vadd.xlane.f32.xlu1 %v263_v7 }
 0x1ae   :  { %v269_v9 = vpop.xlane.xlu0 %268 }
 0x1af   :  { %v277_v10 = vmul.f32 0.0078125, %v269_v9 }
 0x1b1   :  { %v1191_v11 = vsub.f32 %v248_v60, %v277_v10 }
 0x1b2   :  { %v271_v12 = vpop.xlane.xlu0 %270 }
 0x1b3   :  { %v278_v13 = vmul.f32 0.0078125, %v271_v12  ;;  %v285_v14 = vmul.f32 %v1191_v11, %v1191_v11 }
 0x1b5   :  { %v1195_v15 = vsub.f32 %v253_v0, %v278_v13  ;;  %289 = vadd.xlane.f32.xlu0 %v285_v14 }
 0x1b6   :  { %v273_v16 = vpop.xlane.xlu1 %272 }
 0x1b7   :  { %v279_v17 = vmul.f32 0.0078125, %v273_v16  ;;  %v286_v18 = vmul.f32 %v1195_v15, %v1195_v15 }
 0x1b9   :  { %v1199_v19 = vsub.f32 %v258_v4, %v279_v17  ;;  %291 = vadd.xlane.f32.xlu1 %v286_v18 }
 0x1ba   :  { %v275_v20 = vpop.xlane.xlu1 %274 }
 0x1bb   :  { %v280_v21 = vmul.f32 0.0078125, %v275_v20  ;;  %v287_v22 = vmul.f32 %v1199_v19, %v1199_v19 }
 0x1bd   :  { %v1203_v23 = vsub.f32 %v263_v7, %v280_v21  ;;  %293 = vadd.xlane.f32.xlu0 %v287_v22 }
 0x1bf   :  { %v288_v25 = vmul.f32 %v1203_v23, %v1203_v23 }
 0x1c1   :  { %295 = vadd.xlane.f32.xlu1 %v288_v25 }
 0x23e   :  { %v290_v40 = vpop.xlane.xlu0 %289 }
 0x23f   :  { %v297_v41 = vmul.f32 0.0078125, %v290_v40  ;;  %v525_v40 = vld [vmem:[#allocation10 + $0x50] sm:$0xff] }
 0x241   :  { %v301_v42 = vadd.f32 1e-05, %v297_v41  ;;  %v524_v41 = vld [vmem:[#allocation10 + $0x48] sm:$0xff] }
 0x242   :  { %v292_v43 = vpop.xlane.xlu1 %291 }
 0x243   :  { %927 = vrsqrt.f32 %v301_v42  ;;  %v298_v44 = vmul.f32 0.0078125, %v292_v43  ;;  %v523_v42 = vld [vmem:[#allocation10 + $0x40] sm:$0xff]  ;;  %v522_v43 = vld [vmem:[#allocation10 + $0x38] sm:$0xff] }
 0x245   :  { %v302_v45 = vadd.f32 1e-05, %v298_v44  ;;  %v521_v44 = vld [vmem:[#allocation10 + $0x30] sm:$0xff] }
 0x246   :  { %v294_v46 = vpop.xlane.xlu0 %293 }
 0x247   :  { %929 = vrsqrt.f32 %v302_v45  ;;  %v299_v47 = vmul.f32 0.0078125, %v294_v46  ;;  %v520_v45 = vld [vmem:[#allocation10 + $0x28] sm:$0xff]  ;;  %v519_v46 = vld [vmem:[#allocation10 + $0x20] sm:$0xff] }
 0x249   :  { %v303_v48 = vadd.f32 1e-05, %v299_v47  ;;  %v518_v47 = vld [vmem:[#allocation10 + $0x18] sm:$0xff] }
 0x24a   :  { %v296_v49 = vpop.xlane.xlu1 %295 }
 0x24b   :  { %931 = vrsqrt.f32 %v303_v48  ;;  %v300_v50 = vmul.f32 0.0078125, %v296_v49  ;;  %v517_v48 = vld [vmem:[#allocation10 + $0x10] sm:$0xff]  ;;  %v516_v49 = vld [vmem:[#allocation10 + $0x8] sm:$0xff] }
 0x24d   :  { %v304_v51 = vadd.f32 1e-05, %v300_v50  ;;  %v515_v50 = vld [vmem:[#allocation10] sm:$0xff] }
 0x24f   :  { %933 = vrsqrt.f32 %v304_v51 }
 0x250   :  { %v928_v52 = vpop.eup %927 }
 0x251   :  { %v309_v54 = vmul.f32 %v928_v52, %v1191_v11  ;;  %v719_v11 = vld [vmem:[%s1268_s7] ss:$0 sm:$0xff] }
 0x253   :  { %v319_v56 = vmul.f32 %v717_v53, %v309_v54 }
 0x254   :  { %v930_v57 = vpop.eup %929 }
 0x255   :  { %v329_v58 = vadd.f32 %v718_v55, %v319_v56  ;;  %v310_v59 = vmul.f32 %v930_v57, %v1195_v15 }
 0x257   :  { %v333_v60 = vmax.f32 %v329_v58, 0.0  ;;  %v320_v61 = vmul.f32 %v717_v53, %v310_v59 }
 0x258   :  { %v932_v62 = vpop.eup %931 }
 0x259   :  { %841 = vmatprep.mubr.f32.mxu1 %v333_v60  ;;  %v330_v63 = vadd.f32 %v718_v55, %v320_v61  ;;  %v311_v0 = vmul.f32 %v932_v62, %v1199_v19  ;;  %v530_v19 = vld [vmem:[#allocation10 + $0x78] sm:$0xff] }
 0x25a   :  { %847 = vmatprep.subr.mxu0 %v530_v19  ;;  %885 = vmatprep.subr.mxu1 %v530_v19 }
 0x25b   :  { %v334_v1 = vmax.f32 %v330_v63, 0.0  ;;  %v321_v2 = vmul.f32 %v717_v53, %v311_v0  ;;  %848 = vmatpush3.msra.mxu0 %v530_v19  ;;  %v720_v0 = vld [vmem:[%s1269_s8] ss:$0 sm:$0xff] }
 0x25c   :  { %v934_v3 = vpop.eup %933  ;;  %849 = vmatprep.subr.mxu0 %v529_v35 }
 0x25d   :  { %842 = vmatmul.mubr.f32.vlgmr.msra.gmra.mxu1 %v334_v1  ;;  %v331_v4 = vadd.f32 %v718_v55, %v321_v2  ;;  %v312_v5 = vmul.f32 %v934_v3, %v1203_v23  ;;  %850 = vmatpush3.msra.mxu0 %v529_v35  ;;  %v721_v2 = vld [vmem:[%s1270_s9] ss:$0 sm:$0xff] }
 0x25e   :  { %901 = vmatpush3.msra.mxu1 %v530_v19  ;;  %851 = vmatprep.subr.mxu0 %v528_v37 }
 0x25f   :  { %v335_v6 = vmax.f32 %v331_v4, 0.0  ;;  %v322_v7 = vmul.f32 %v717_v53, %v312_v5  ;;  %886 = vmatprep.subr.mxu1 %v529_v35  ;;  %852 = vmatpush3.msra.mxu0 %v528_v37 }
 0x260   :  { %902 = vmatpush3.msra.mxu1 %v529_v35  ;;  %853 = vmatprep.subr.mxu0 %v527_v38 }
 0x261   :  { %844 = vmatprep.mubr.f32.mxu1 %v335_v6  ;;  %v332_v8 = vadd.f32 %v718_v55, %v322_v7  ;;  %887 = vmatprep.subr.mxu1 %v528_v37 }
 0x262   :  { %903 = vmatpush3.msra.mxu1 %v528_v37  ;;  %854 = vmatpush3.msra.mxu0 %v527_v38 }
 0x263   :  { %v336_v9 = vmax.f32 %v332_v8, 0.0  ;;  %888 = vmatprep.subr.mxu1 %v527_v38  ;;  %855 = vmatprep.subr.mxu0 %v526_v39 }
 0x264   :  { %904 = vmatpush3.msra.mxu1 %v527_v38  ;;  %856 = vmatpush3.msra.mxu0 %v526_v39 }
 0x265   :  { %845 = vmatmul.mubr.f32.gmra.mxu1 %v336_v9  ;;  %889 = vmatprep.subr.mxu1 %v526_v39 }
 0x266   :  { %857 = vmatprep.subr.mxu0 %v525_v40  ;;  %905 = vmatpush3.msra.mxu1 %v526_v39 }
 0x267   :  { %858 = vmatpush3.msra.mxu0 %v525_v40  ;;  %890 = vmatprep.subr.mxu1 %v525_v40 }
 0x268   :  { %859 = vmatprep.subr.mxu0 %v524_v41  ;;  %906 = vmatpush3.msra.mxu1 %v525_v40 }
 0x269   :  { %860 = vmatpush3.msra.mxu0 %v524_v41  ;;  %891 = vmatprep.subr.mxu1 %v524_v41 }
 0x26a   :  { %861 = vmatprep.subr.mxu0 %v523_v42  ;;  %907 = vmatpush3.msra.mxu1 %v524_v41 }
 0x26b   :  { %862 = vmatpush3.msra.mxu0 %v523_v42  ;;  %892 = vmatprep.subr.mxu1 %v523_v42 }
 0x26c   :  { %863 = vmatprep.subr.mxu0 %v522_v43  ;;  %908 = vmatpush3.msra.mxu1 %v523_v42 }
 0x26d   :  { %864 = vmatpush3.msra.mxu0 %v522_v43  ;;  %893 = vmatprep.subr.mxu1 %v522_v43 }
 0x26e   :  { %865 = vmatprep.subr.mxu0 %v521_v44  ;;  %909 = vmatpush3.msra.mxu1 %v522_v43 }
 0x26f   :  { %866 = vmatpush3.msra.mxu0 %v521_v44  ;;  %894 = vmatprep.subr.mxu1 %v521_v44 }
 0x270   :  { %867 = vmatprep.subr.mxu0 %v520_v45  ;;  %910 = vmatpush3.msra.mxu1 %v521_v44 }
 0x271   :  { %868 = vmatpush3.msra.mxu0 %v520_v45  ;;  %895 = vmatprep.subr.mxu1 %v520_v45 }
 0x272   :  { %869 = vmatprep.subr.mxu0 %v519_v46  ;;  %911 = vmatpush3.msra.mxu1 %v520_v45 }
 0x273   :  { %870 = vmatpush3.msra.mxu0 %v519_v46  ;;  %896 = vmatprep.subr.mxu1 %v519_v46 }
 0x274   :  { %871 = vmatprep.subr.mxu0 %v518_v47  ;;  %912 = vmatpush3.msra.mxu1 %v519_v46 }
 0x275   :  { %872 = vmatpush3.msra.mxu0 %v518_v47  ;;  %897 = vmatprep.subr.mxu1 %v518_v47 }
 0x276   :  { %873 = vmatprep.subr.mxu0 %v517_v48  ;;  %913 = vmatpush3.msra.mxu1 %v518_v47 }
 0x277   :  { %874 = vmatpush3.msra.mxu0 %v517_v48  ;;  %898 = vmatprep.subr.mxu1 %v517_v48 }
 0x278   :  { %875 = vmatprep.subr.mxu0 %v516_v49  ;;  %914 = vmatpush3.msra.mxu1 %v517_v48 }
 0x279   :  { %876 = vmatpush3.msra.mxu0 %v516_v49  ;;  %899 = vmatprep.subr.mxu1 %v516_v49 }
 0x27a   :  { %877 = vmatprep.subr.mxu0 %v515_v50  ;;  %915 = vmatpush3.msra.mxu1 %v516_v49 }
 0x27b   :  { %878 = vmatpush3.msra.mxu0 %v515_v50  ;;  %900 = vmatprep.subr.mxu1 %v515_v50 }
 0x27c   :  { %916 = vmatpush3.msra.mxu1 %v515_v50 }
 0x31d   :  { %v843_v10 = vpop.f32.mrf.mxu1 }
 0x31e   :  { %v432_v14 = vadd.f32 %v843_v10, %v719_v11 }
 0x31f   :  { %v426_v12 = vpop.f32.mrf.mxu1 }
 0x320   :  { %v427_v13 = vadd.f32 %v719_v11, %v426_v12 }
 0x322   :  { %447 = vadd.xlane.f32.xlu0 %v427_v13 }
 0x325   :  { %v846_v15 = vpop.f32.mrf.mxu1 }
 0x326   :  { %449 = vadd.xlane.f32.xlu0 %v432_v14  ;;  %v442_v18 = vadd.f32 %v846_v15, %v719_v11 }
 0x327   :  { %v436_v16 = vpop.f32.mrf.mxu1 }
 0x328   :  { %v437_v17 = vadd.f32 %v719_v11, %v436_v16 }
 0x32a   :  { %451 = vadd.xlane.f32.xlu1 %v437_v17 }
 0x32e   :  { %453 = vadd.xlane.f32.xlu1 %v442_v18 }
 0x3ab   :  { %v448_v20 = vpop.xlane.xlu0 %447 }
 0x3ac   :  { %v455_v21 = vmul.f32 0.0078125, %v448_v20 }
 0x3ae   :  { %v1220_v22 = vsub.f32 %v427_v13, %v455_v21  ;;  %v722_v21 = vld [vmem:[%s1272_s11] ss:$0 sm:$0xff] }
 0x3af   :  { %v450_v23 = vpop.xlane.xlu0 %449 }
 0x3b0   :  { %v456_v24 = vmul.f32 0.0078125, %v450_v23  ;;  %v463_v25 = vmul.f32 %v1220_v22, %v1220_v22 }
 0x3b2   :  { %v1224_v26 = vsub.f32 %v432_v14, %v456_v24  ;;  %467 = vadd.xlane.f32.xlu0 %v463_v25 }
 0x3b3   :  { %v452_v27 = vpop.xlane.xlu1 %451 }
 0x3b4   :  { %v457_v28 = vmul.f32 0.0078125, %v452_v27  ;;  %v464_v29 = vmul.f32 %v1224_v26, %v1224_v26 }
 0x3b6   :  { %v1228_v30 = vsub.f32 %v437_v17, %v457_v28  ;;  %469 = vadd.xlane.f32.xlu0 %v464_v29 }
 0x3b7   :  { %v454_v31 = vpop.xlane.xlu1 %453 }
 0x3b8   :  { %v458_v32 = vmul.f32 0.0078125, %v454_v31  ;;  %v465_v33 = vmul.f32 %v1228_v30, %v1228_v30 }
 0x3ba   :  { %v1232_v34 = vsub.f32 %v442_v18, %v458_v32  ;;  %471 = vadd.xlane.f32.xlu1 %v465_v33 }
 0x3bc   :  { %v466_v36 = vmul.f32 %v1232_v34, %v1232_v34 }
 0x3be   :  { %473 = vadd.xlane.f32.xlu1 %v466_v36 }
 0x43b   :  { %v468_v51 = vpop.xlane.xlu0 %467 }
 0x43c   :  { %v475_v52 = vmul.f32 0.0078125, %v468_v51 }
 0x43e   :  { %v479_v53 = vadd.f32 1e-05, %v475_v52 }
 0x43f   :  { %v470_v54 = vpop.xlane.xlu0 %469 }
 0x440   :  { %935 = vrsqrt.f32 %v479_v53  ;;  %v476_v55 = vmul.f32 0.0078125, %v470_v54 }
 0x442   :  { %v480_v56 = vadd.f32 1e-05, %v476_v55 }
 0x443   :  { %v472_v57 = vpop.xlane.xlu1 %471 }
 0x444   :  { %937 = vrsqrt.f32 %v480_v56  ;;  %v477_v58 = vmul.f32 0.0078125, %v472_v57 }
 0x446   :  { %v481_v59 = vadd.f32 1e-05, %v477_v58 }
 0x447   :  { %v474_v60 = vpop.xlane.xlu1 %473 }
 0x448   :  { %939 = vrsqrt.f32 %v481_v59  ;;  %v478_v61 = vmul.f32 0.0078125, %v474_v60  ;;  %v723_v59 = vld [vmem:[%s1273_s12] ss:$0 sm:$0xff]  ;;  %s1088_s12 = smov [#allocation11]  }
 0x449   :  { %s702_s17 = sshll.u32 %s1088_s12, 4  ;;  %s703_s17 = int_to_ptr.vmem [resolvable:$true] %s702_s17 }
 0x44a   :  { %v482_v62 = vadd.f32 1e-05, %v478_v61  ;;  %p1056_p12 = scmp.lt.s32.totalorder %s703_s17, %s703_s17 }
 0x44c   :  { %941 = vrsqrt.f32 %v482_v62  ;;  %v724_v62 = vld [vmem:[%s1274_s13] ss:$0 sm:$0xff]  ;;  %s1051_s13 = scalar_lea.vmem %s703_s17, 512 }
 0x44d   :  { %v936_v63 = vpop.eup %935  ;;  %p1052_p11 = scmp.ne.s32.totalorder %s703_s17, %s1051_s13  ;;  %p1057_p13 = scmp.lt.s32.totalorder %s1051_s13, %s1051_s13 }
 0x44e   :  { %v487_v1 = vmul.f32 %v936_v63, %v1220_v22 }
 0x44f   :  { %p1058_p0 = por %p1057_p13, %p1056_p12 }
 0x450   :  { %v497_v3 = vmul.f32 %v720_v0, %v487_v1 }
 0x451   :  { %v938_v4 = vpop.eup %937  ;;  %p1059_p1 = pnand %p1058_p0, %p1052_p11 }
 0x452   :  { %v488_v5 = vmul.f32 %v938_v4, %v1224_v26  ;;  %v507_v6 = vadd.f32 %v721_v2, %v497_v3 }
 0x454   :  { %v511_v7 = vmax.f32 %v507_v6, 0.0  ;;  %v498_v8 = vmul.f32 %v720_v0, %v488_v5 }
 0x455   :  { %v940_v9 = vpop.eup %939 }
 0x456   :  { %879 = vmatprep.mubr.f32.mxu0 %v511_v7  ;;  %v508_v10 = vadd.f32 %v721_v2, %v498_v8  ;;  %v489_v11 = vmul.f32 %v940_v9, %v1228_v30 }
 0x458   :  { %v512_v12 = vmax.f32 %v508_v10, 0.0  ;;  %v499_v13 = vmul.f32 %v720_v0, %v489_v11 }
 0x459   :  { %v942_v14 = vpop.eup %941 }
 0x45a   :  { %v490_v15 = vmul.f32 %v942_v14, %v1232_v34  ;;  %880 = vmatmul.mubr.f32.vlgmr.msra.gmra.mxu0 %v512_v12  ;;  %v509_v16 = vadd.f32 %v721_v2, %v499_v13 }
 0x45c   :  { %v513_v17 = vmax.f32 %v509_v16, 0.0  ;;  %v500_v18 = vmul.f32 %v720_v0, %v490_v15 }
 0x45e   :  { %882 = vmatprep.mubr.f32.mxu1 %v513_v17  ;;  %v510_v19 = vadd.f32 %v721_v2, %v500_v18 }
 0x460   :  { %v514_v20 = vmax.f32 %v510_v19, 0.0 }
 0x462   :  { %883 = vmatmul.mubr.f32.vlgmr.msra.gmra.mxu1 %v514_v20 }
 0x51a   :  { %v881_v22 = vpop.f32.mrf.mxu0 }
 0x51b   :  { %v610_v23 = vadd.f32 %v881_v22, %v722_v21 }
 0x51c   :  { %v604_v24 = vpop.f32.mrf.mxu0 }
 0x51d   :  { %v605_v25 = vadd.f32 %v722_v21, %v604_v24  ;;  %627 = vadd.xlane.f32.xlu1 %v610_v23 }
 0x51f   :  { %625 = vadd.xlane.f32.xlu0 %v605_v25 }
 0x522   :  { %v884_v26 = vpop.f32.mrf.mxu1 }
 0x523   :  { %v620_v27 = vadd.f32 %v884_v26, %v722_v21 }
 0x524   :  { %v614_v28 = vpop.f32.mrf.mxu1 }
 0x525   :  { %v615_v29 = vadd.f32 %v722_v21, %v614_v28  ;;  %631 = vadd.xlane.f32.xlu1 %v620_v27 }
 0x527   :  { %629 = vadd.xlane.f32.xlu0 %v615_v29 }
 0x5a6   :  { %v628_v30 = vpop.xlane.xlu1 %627 }
 0x5a7   :  { %v634_v31 = vmul.f32 0.0078125, %v628_v30 }
 0x5a8   :  { %v626_v32 = vpop.xlane.xlu0 %625 }
 0x5a9   :  { %v638_v33 = vsub.f32 %v610_v23, %v634_v31  ;;  %v633_v34 = vmul.f32 0.0078125, %v626_v32 }
 0x5ab   :  { %v637_v35 = vsub.f32 %v605_v25, %v633_v34  ;;  %v642_v36 = vmul.f32 %v638_v33, %v638_v33 }
 0x5ad   :  { %647 = vadd.xlane.f32.xlu1 %v642_v36  ;;  %v641_v37 = vmul.f32 %v637_v35, %v637_v35 }
 0x5ae   :  { %v632_v38 = vpop.xlane.xlu1 %631 }
 0x5af   :  { %v636_v39 = vmul.f32 0.0078125, %v632_v38  ;;  %645 = vadd.xlane.f32.xlu0 %v641_v37 }
 0x5b0   :  { %v630_v40 = vpop.xlane.xlu0 %629 }
 0x5b1   :  { %v640_v41 = vsub.f32 %v620_v27, %v636_v39  ;;  %v635_v42 = vmul.f32 0.0078125, %v630_v40 }
 0x5b3   :  { %v639_v43 = vsub.f32 %v615_v29, %v635_v42  ;;  %v644_v44 = vmul.f32 %v640_v41, %v640_v41 }
 0x5b5   :  { %651 = vadd.xlane.f32.xlu1 %v644_v44  ;;  %v643_v45 = vmul.f32 %v639_v43, %v639_v43 }
 0x5b7   :  { %649 = vadd.xlane.f32.xlu0 %v643_v45 }
 0x636   :  { %v648_v46 = vpop.xlane.xlu1 %647 }
 0x637   :  { %v654_v47 = vmul.f32 0.0078125, %v648_v46 }
 0x638   :  { %v646_v48 = vpop.xlane.xlu0 %645 }
 0x639   :  { %v658_v49 = vadd.f32 1e-05, %v654_v47  ;;  %v653_v50 = vmul.f32 0.0078125, %v646_v48 }
 0x63b   :  { %943 = vrsqrt.f32 %v658_v49  ;;  %v657_v51 = vadd.f32 1e-05, %v653_v50 }
 0x63d   :  { %945 = vrsqrt.f32 %v657_v51 }
 0x63e   :  { %v652_v52 = vpop.xlane.xlu1 %651 }
 0x63f   :  { %v656_v53 = vmul.f32 0.0078125, %v652_v52 }
 0x640   :  { %v650_v54 = vpop.xlane.xlu0 %649 }
 0x641   :  { %v660_v55 = vadd.f32 1e-05, %v656_v53  ;;  %v655_v56 = vmul.f32 0.0078125, %v650_v54 }
 0x643   :  { %947 = vrsqrt.f32 %v660_v55  ;;  %v659_v57 = vadd.f32 1e-05, %v655_v56 }
 0x645   :  { %949 = vrsqrt.f32 %v659_v57 }
 0x648   :  { %v944_v58 = vpop.eup %943 }
 0x649   :  { %v666_v60 = vmul.f32 %v944_v58, %v638_v33 }
 0x64a   :  { %v946_v61 = vpop.eup %945 }
 0x64b   :  { %v665_v63 = vmul.f32 %v946_v61, %v637_v35  ;;  %v676_v0 = vmul.f32 %v723_v59, %v666_v60 }
 0x64d   :  { %v675_v1 = vmul.f32 %v723_v59, %v665_v63  ;;  %v686_v2 = vadd.f32 %v724_v62, %v676_v0 }
 0x64f   :  { %v685_v3 = vadd.f32 %v724_v62, %v675_v1  ;;  %v690_v4 = vmax.f32 %v686_v2, 0.0 }
 0x650   :  { %v948_v5 = vpop.eup %947 }
 0x651   :  { %v668_v6 = vmul.f32 %v948_v5, %v640_v41  ;;  %v689_v7 = vmax.f32 %v685_v3, 0.0  ;;  %694 = vst [vmem:[#allocation11 + $0x8] sm:$0xff] %v690_v4 }
 0x652   :  { %v950_v8 = vpop.eup %949 }
 0x653   :  { %v667_v9 = vmul.f32 %v950_v8, %v639_v43  ;;  %v678_v10 = vmul.f32 %v723_v59, %v668_v6  ;;  %693 = vst [vmem:[#allocation11] sm:$0xff] %v689_v7 }
 0x655   :  { %v677_v11 = vmul.f32 %v723_v59, %v667_v9  ;;  %v688_v12 = vadd.f32 %v724_v62, %v678_v10 }
 0x657   :  { %v687_v13 = vadd.f32 %v724_v62, %v677_v11  ;;  %v692_v14 = vmax.f32 %v688_v12, 0.0 }
 0x659   :  { %v691_v15 = vmax.f32 %v687_v13, 0.0  ;;  %696 = vst [vmem:[#allocation11 + $0x18] sm:$0xff] %v692_v14 }
 0x65b   :  { %695 = vst [vmem:[#allocation11 + $0x10] sm:$0xff] %v691_v15 }
 0x65c   :  { %1062 = shalt.err (!%p1059_p1)
}
 0x65d   :  { %708 = dma.vmem_to_hbm [thread:$0]  %s703_s17, 512, %s1275_s14, [#allocation4], %s1082_s23, %s1082_s23, %s1083_s24  }
 0x65e   :  { %1077 = dma.done.wait [#allocation4], 512  }
 0x65f   :  { %1078 = vsyncadd [#allocation4], 4294966784 }
 0x660   :  { %712 = vsyncpa [#allocation3], 1 }
 0x661   :  { %713 = vsyncpa [#allocation6], 1 }
 0x662   :  { %714 = vsyncpa [#allocation9], 1 }
 0x663   :  { %715 = vsyncpa [#allocation4], 1 }

</bundles_post_ra>
